<compile_context>
chip_gen: v5e
topology: v5e:2x2
jax: 0.10.0
libtpu: 0.0.40
codegen_flags: <defaults>
</compile_context>

<pallas_src>
import math
import jax
import jax.numpy as jnp
from jax import lax
from jax.experimental import pallas as pl
from jax.experimental.pallas import tpu as pltpu

_INV_SQRT2 = 1.0 / math.sqrt(2.0)


def _round_up(x, m):
    return ((x + m - 1) // m) * m


def _default_vmem_limit():
    # v5e/v6e (128 MiB physical) -> ~100 MiB; v7x (64 MiB physical) -> ~48 MiB.
    try:
        cap = int(pltpu.get_tpu_info().vmem_capacity_bytes)
        return min(100 * 1024 * 1024, cap - 16 * 1024 * 1024)
    except Exception:
        return 64 * 1024 * 1024


def mlp_kernel(x_ref, w1_ref, b1_ref, w2_ref, b2_ref, o_ref, h_ref):
    # Grid = (row tiles i [parallel], output-column tiles j [arbitrary]).
    # fc1 + GELU run once per row tile (j == 0) and are cached in VMEM scratch h_ref;
    # every j tile reuses the cache for its fc2 column slice.
    @pl.when(pl.program_id(1) == 0)
    def _():
        h = jnp.dot(x_ref[...], w1_ref[...], preferred_element_type=jnp.float32)
        h = h + b1_ref[...]                                   # f32 bias add
        # Exact (erf) GELU, matching torch.nn.GELU(approximate='none'); stays f32.
        h = 0.5 * h * (1.0 + lax.erf(h * _INV_SQRT2))
        # drop1: p = 0 -> identity
        h_ref[...] = h.astype(h_ref.dtype)                    # cache in compute dtype

    y = jnp.dot(h_ref[...], w2_ref[...], preferred_element_type=jnp.float32)
    y = y + b2_ref[...]
    # drop2: p = 0 -> identity
    o_ref[...] = y.astype(o_ref.dtype)


def prepare_params(w1, b1, w2, b2, *, compute_dtype=jnp.bfloat16, tn=512):
    """One-time pad/cast of the weights (hoisted out of the per-step forward).

    Pads all feature dims to lane-dense multiples of 128, pads the output dim UP to a
    multiple of the output-column tile tn, and casts weights to the compute dtype
    (biases stay f32)."""
    compute_dtype = jnp.dtype(compute_dtype)
    in_f, hid = w1.shape
    out_f = w2.shape[1]

    in_p = _round_up(in_f, 128)
    hid_p = _round_up(hid, 128)
    # Output-column tile: multiple of 128, never larger than needed; pad out_p up to it.
    tn_eff = max(128, (min(tn, _round_up(out_f, 128)) // 128) * 128)
    out_p = _round_up(out_f, tn_eff)

    w1p = jnp.pad(w1.astype(compute_dtype), ((0, in_p - in_f), (0, hid_p - hid)))
    w2p = jnp.pad(w2.astype(compute_dtype), ((0, hid_p - hid), (0, out_p - out_f)))
    b1p = jnp.pad(b1.astype(jnp.float32).reshape(1, hid), ((0, 0), (0, hid_p - hid)))
    b2p = jnp.pad(b2.astype(jnp.float32).reshape(1, out_f), ((0, 0), (0, out_p - out_f)))

    return dict(w1=w1p, b1=b1p, w2=w2p, b2=b2p,
                in_f=in_f, hid=hid, out_f=out_f,
                in_p=in_p, hid_p=hid_p, out_p=out_p, tn=tn_eff,
                compute_dtype=compute_dtype)


def mlp_forward(x, params, *, tm=256, vmem_limit_bytes=None):
    """x: (..., in_features) -> (..., out_features). params from prepare_params()."""
    orig_dtype = x.dtype
    cdt = params["compute_dtype"]
    in_f, in_p = params["in_f"], params["in_p"]
    hid_p = params["hid_p"]
    out_f, out_p, tn_eff = params["out_f"], params["out_p"], params["tn"]

    *lead, xf = x.shape
    assert xf == in_f, f"expected last dim {in_f}, got {xf}"
    M = math.prod(lead) if lead else 1

    # Row tile: multiple of the sublane packing of the compute dtype
    # (f32 -> 8, bf16 -> 16, 8-bit -> 32), capped at padded M.
    row_align = 8 * (4 // cdt.itemsize)
    tm = max(row_align, (tm // row_align) * row_align)
    tm_eff = min(tm, _round_up(M, row_align))
    M_p = _round_up(M, tm_eff)

    x2 = x.reshape(M, in_f).astype(cdt)
    x2 = jnp.pad(x2, ((0, M_p - M), (0, in_p - in_f)))

    if vmem_limit_bytes is None:
        vmem_limit_bytes = _default_vmem_limit()

    grid = (M_p // tm_eff, out_p // tn_eff)

    out = pl.pallas_call(
        mlp_kernel,
        out_shape=jax.ShapeDtypeStruct((M_p, out_p), orig_dtype),
        grid_spec=pltpu.PrefetchScalarGridSpec(
            num_scalar_prefetch=0,
            grid=grid,
            in_specs=[
                pl.BlockSpec((tm_eff, in_p), lambda i, j: (i, 0)),    # x row tile
                pl.BlockSpec((in_p, hid_p), lambda i, j: (0, 0)),     # W1 (grid-invariant)
                pl.BlockSpec((1, hid_p), lambda i, j: (0, 0)),        # b1 (f32)
                pl.BlockSpec((hid_p, tn_eff), lambda i, j: (0, j)),   # W2 column tile
                pl.BlockSpec((1, tn_eff), lambda i, j: (0, j)),       # b2 (f32)
            ],
            out_specs=pl.BlockSpec((tm_eff, tn_eff), lambda i, j: (i, j)),
            # Cached GELU(fc1) hidden activation, reused across the j axis.
            scratch_shapes=[pltpu.VMEM((tm_eff, hid_p), cdt)],
        ),
        compiler_params=pltpu.CompilerParams(
            # j carries the h-cache state -> "arbitrary"; i stays "parallel" (megacore).
            dimension_semantics=("parallel", "arbitrary"),
            vmem_limit_bytes=vmem_limit_bytes,
        ),
    )(x2, params["w1"], params["b1"], params["w2"], params["b2"])

    out = out[:M, :out_f]
    return out.reshape(*lead, out_f)


def init_params(key, in_f, hid, out_f):
    """Deterministic init mimicking nn.Linear default (uniform(-1/sqrt(fan_in), +))."""
    k1, k2, k3, k4 = jax.random.split(key, 4)
    lim1 = 1.0 / math.sqrt(in_f)
    lim2 = 1.0 / math.sqrt(hid)
    w1 = jax.random.uniform(k1, (in_f, hid), jnp.float32, -lim1, lim1)
    b1 = jax.random.uniform(k2, (hid,), jnp.float32, -lim1, lim1)
    w2 = jax.random.uniform(k3, (hid, out_f), jnp.float32, -lim2, lim2)
    b2 = jax.random.uniform(k4, (out_f,), jnp.float32, -lim2, lim2)
    return w1, b1, w2, b2


if __name__ == "__main__":
    key = jax.random.PRNGKey(0)
    kx, kp = jax.random.split(key)

    B, S = 2, 8
    in_features, hidden_features, out_features = 32, 64, 32

    x = jax.random.normal(kx, (B, S, in_features), jnp.float32)
    w1, b1, w2, b2 = init_params(kp, in_features, hidden_features, out_features)

    # Pure-JAX reference (exact-erf GELU; dropout p=0 is identity).
    h_ref = x.reshape(-1, in_features) @ w1 + b1
    h_ref = 0.5 * h_ref * (1.0 + lax.erf(h_ref / math.sqrt(2.0)))
    y_ref = (h_ref @ w2 + b2).reshape(B, S, out_features)

    # f32 compute path — tight check.
    params_f32 = prepare_params(w1, b1, w2, b2, compute_dtype=jnp.float32)
    out_f32 = mlp_forward(x, params_f32, tm=256)
    out_f32 = jax.block_until_ready(out_f32)
    assert out_f32.shape == (B, S, out_features)
    assert jnp.allclose(out_f32, y_ref, atol=1e-3, rtol=1e-3)

    # bf16 operand path (f32 MXU accumulation) — the throughput path on all chips.
    params_bf16 = prepare_params(w1, b1, w2, b2, compute_dtype=jnp.bfloat16)
    out_bf16 = mlp_forward(x, params_bf16, tm=256)
    out_bf16 = jax.block_until_ready(out_bf16)
    assert out_bf16.shape == (B, S, out_features)
    assert float(jnp.max(jnp.abs(out_bf16 - y_ref))) < 0.2

    print("KERNEL_OK")
</pallas_src>

<mosaic_0001>
module attributes {stable_mosaic.version = 11 : i64} {
  func.func @mlp_kernel(%arg0: i32, %arg1: i32, %arg2: memref<16x128xf32, #tpu.memory_space<vmem>>, %arg3: memref<128x128xf32, #tpu.memory_space<vmem>>, %arg4: memref<1x128xf32, #tpu.memory_space<vmem>>, %arg5: memref<128x128xf32, #tpu.memory_space<vmem>>, %arg6: memref<1x128xf32, #tpu.memory_space<vmem>>, %arg7: memref<16x128xf32, #tpu.memory_space<vmem>>, %arg8: memref<16x128xf32, #tpu.memory_space<vmem>>) attributes {dimension_semantics = [#tpu.dimension_semantics<parallel>, #tpu.dimension_semantics<arbitrary>], iteration_bounds = array<i64: 1, 1>, scalar_prefetch = 0 : i64, scratch_operands = 1 : i64, tpu.core_type = #tpu.core_type<tc>, window_params = [{transform_indices = @transform_0, window_bounds = array<i64: 16, 128>}, {pipeline_mode = #tpu.pipeline_mode<synchronous>, transform_indices = @transform_1, window_bounds = array<i64: 128, 128>}, {pipeline_mode = #tpu.pipeline_mode<synchronous>, transform_indices = @transform_2, window_bounds = array<i64: 1, 128>}, {transform_indices = @transform_3, window_bounds = array<i64: 128, 128>}, {transform_indices = @transform_4, window_bounds = array<i64: 1, 128>}, {transform_indices = @transform_5, window_bounds = array<i64: 16, 128>}]} {
    %c0_i32 = arith.constant 0 : i32
    %0 = arith.cmpi eq, %arg1, %c0_i32 : i32
    %1 = arith.extui %0 : i1 to i32
    %c0_i32_0 = arith.constant 0 : i32
    %2 = arith.cmpi ne, %1, %c0_i32_0 : i32
    scf.if %2 {
      %c0_8 = arith.constant 0 : index
      %c0_9 = arith.constant 0 : index
      %10 = vector.load %arg2[%c0_8, %c0_9] : memref<16x128xf32, #tpu.memory_space<vmem>>, vector<16x128xf32>
      %c0_10 = arith.constant 0 : index
      %c0_11 = arith.constant 0 : index
      %11 = vector.load %arg3[%c0_10, %c0_11] : memref<128x128xf32, #tpu.memory_space<vmem>>, vector<128x128xf32>
      %cst_12 = arith.constant dense<0.000000e+00> : vector<16x128xf32>
      %12 = tpu.matmul %10, %11, %cst_12 {dimension_numbers = #tpu.dot_dimension_numbers<[1], [0], [0], [1], [0, 0, 1, 1], [], []>} : vector<16x128xf32>, vector<128x128xf32>, vector<16x128xf32> -> vector<16x128xf32>
      %c0_13 = arith.constant 0 : index
      %c0_14 = arith.constant 0 : index
      %13 = vector.load %arg4[%c0_13, %c0_14] : memref<1x128xf32, #tpu.memory_space<vmem>>, vector<1x128xf32>
      %14 = vector.broadcast %13 : vector<1x128xf32> to vector<16x128xf32>
      %15 = arith.addf %12, %14 : vector<16x128xf32>
      %cst_15 = arith.constant 5.000000e-01 : f32
      %16 = vector.broadcast %cst_15 : f32 to vector<16x128xf32>
      %17 = arith.mulf %16, %15 : vector<16x128xf32>
      %cst_16 = arith.constant 0.707106769 : f32
      %18 = vector.broadcast %cst_16 : f32 to vector<16x128xf32>
      %19 = arith.mulf %15, %18 : vector<16x128xf32>
      %20 = math.erf %19 : vector<16x128xf32>
      %cst_17 = arith.constant 1.000000e+00 : f32
      %21 = vector.broadcast %cst_17 : f32 to vector<16x128xf32>
      %22 = arith.addf %21, %20 : vector<16x128xf32>
      %23 = arith.mulf %17, %22 : vector<16x128xf32>
      %c0_18 = arith.constant 0 : index
      %c0_19 = arith.constant 0 : index
      %24 = vector.load %arg8[%c0_18, %c0_19] : memref<16x128xf32, #tpu.memory_space<vmem>>, vector<16x128xf32>
      tpu.vector_store %arg8[%c0_18, %c0_19], %23 {strides = array<i32>} : memref<16x128xf32, #tpu.memory_space<vmem>>, vector<16x128xf32>,
    } else {
    }
    %c0 = arith.constant 0 : index
    %c0_1 = arith.constant 0 : index
    %3 = vector.load %arg8[%c0, %c0_1] : memref<16x128xf32, #tpu.memory_space<vmem>>, vector<16x128xf32>
    %c0_2 = arith.constant 0 : index
    %c0_3 = arith.constant 0 : index
    %4 = vector.load %arg5[%c0_2, %c0_3] : memref<128x128xf32, #tpu.memory_space<vmem>>, vector<128x128xf32>
    %cst = arith.constant dense<0.000000e+00> : vector<16x128xf32>
    %5 = tpu.matmul %3, %4, %cst {dimension_numbers = #tpu.dot_dimension_numbers<[1], [0], [0], [1], [0, 0, 1, 1], [], []>} : vector<16x128xf32>, vector<128x128xf32>, vector<16x128xf32> -> vector<16x128xf32>
    %c0_4 = arith.constant 0 : index
    %c0_5 = arith.constant 0 : index
    %6 = vector.load %arg6[%c0_4, %c0_5] : memref<1x128xf32, #tpu.memory_space<vmem>>, vector<1x128xf32>
    %7 = vector.broadcast %6 : vector<1x128xf32> to vector<16x128xf32>
    %8 = arith.addf %5, %7 : vector<16x128xf32>
    %c0_6 = arith.constant 0 : index
    %c0_7 = arith.constant 0 : index
    %9 = vector.load %arg7[%c0_6, %c0_7] : memref<16x128xf32, #tpu.memory_space<vmem>>, vector<16x128xf32>
    tpu.vector_store %arg7[%c0_6, %c0_7], %8 {strides = array<i32>} : memref<16x128xf32, #tpu.memory_space<vmem>>, vector<16x128xf32>,
    return
  }
  func.func @transform_0(%arg0: i32, %arg1: i32) -> (i32, i32) {
    %c0_i32 = arith.constant 0 : i32
    %c0_i32_0 = arith.constant 0 : i32
    return %arg0, %c0_i32 : i32, i32
  }
  func.func @transform_1(%arg0: i32, %arg1: i32) -> (i32, i32) {
    %c0_i32 = arith.constant 0 : i32
    %c0_i32_0 = arith.constant 0 : i32
    %c0_i32_1 = arith.constant 0 : i32
    return %c0_i32, %c0_i32_0 : i32, i32
  }
  func.func @transform_2(%arg0: i32, %arg1: i32) -> (i32, i32) {
    %c0_i32 = arith.constant 0 : i32
    %c0_i32_0 = arith.constant 0 : i32
    %c0_i32_1 = arith.constant 0 : i32
    return %c0_i32, %c0_i32_0 : i32, i32
  }
  func.func @transform_3(%arg0: i32, %arg1: i32) -> (i32, i32) {
    %c0_i32 = arith.constant 0 : i32
    %c0_i32_0 = arith.constant 0 : i32
    return %c0_i32, %arg1 : i32, i32
  }
  func.func @transform_4(%arg0: i32, %arg1: i32) -> (i32, i32) {
    %c0_i32 = arith.constant 0 : i32
    %c0_i32_0 = arith.constant 0 : i32
    return %c0_i32, %arg1 : i32, i32
  }
  func.func @transform_5(%arg0: i32, %arg1: i32) -> (i32, i32) {
    %c0_i32 = arith.constant 0 : i32
    return %arg0, %arg1 : i32, i32
  }
}

</mosaic_0001>

<bundles_post_ra>
// kernel: tpu_custom_call.1
= control target key start
LH: loop header
LB: loop body
LE: loop exit
PB: predicated region body
PF: predicated region fallthrough
CT: control target
= control target key end

     0   :  { %10 = vsyncpa [#allocation4], 0  ;;  %s518_s0 = inlined_call_operand.hbm [shape: f32[16,128], index: 0, kind: input, shape index: {}]   ;;  %s519_s1 = inlined_call_operand.hbm [shape: f32[128,128], index: 1, kind: input, shape index: {}]   ;;  %s520_s2 = inlined_call_operand.vmem [shape: f32[1,128], index: 2, kind: input, shape index: {}]   ;;  %s521_s3 = inlined_call_operand.hbm [shape: f32[128,128], index: 3, kind: input, shape index: {}]   ;;  %s522_s4 = inlined_call_operand.vmem [shape: f32[1,128], index: 4, kind: input, shape index: {}]   ;;  %s523_s5 = inlined_call_operand.hbm [shape: f32[16,128], index: 5, kind: output, shape index: {}]  }
   0x1   :  { %11 = vsyncpa [#allocation7], 0 }
   0x2   :  { %12 = vsyncpa [#allocation5], 0  ;;  %s30_s20 = sshll.u32 %s519_s1, 4  ;;  %s422_s21 = smov [#allocation6]   ;;  %s31_s20 = int_to_ptr.hbm [resolvable:$true] %s30_s20 }
   0x3   :  { %s32_s22 = sshll.u32 %s422_s21, 4  ;;  %s17_s25 = sshll.u32 %s518_s0, 4  ;;  %s33_s22 = int_to_ptr.vmem [resolvable:$true] %s32_s22  ;;  %s18_s25 = int_to_ptr.hbm [resolvable:$true] %s17_s25 }
   0x4   :  { %s423_s26 = smov 128   ;;  %s424_s27 = smov 8  }
   0x5   :  { %38 = dma.hbm_to_vmem [thread:$0]  %s31_s20, 2048, %s33_s22, [#allocation7], %s423_s26, %s423_s26, %s424_s27  }
   0x6   :  { %s425_s28 = smov [#allocation3]   ;;  %s45_s1 = sshll.u32 %s521_s3, 4  ;;  %s46_s1 = int_to_ptr.hbm [resolvable:$true] %s45_s1 }
   0x7   :  { %s19_s29 = sshll.u32 %s425_s28, 4  ;;  %s426_s0 = smov [#allocation8]   ;;  %s20_s29 = int_to_ptr.vmem [resolvable:$true] %s19_s29 }
   0x8   :  { %25 = dma.hbm_to_vmem [thread:$0]  %s18_s25, 256, %s20_s29, [#allocation4], %s423_s26, %s423_s26, %s424_s27  }
   0x9   :  { %s47_s7 = sshll.u32 %s426_s0, 4  ;;  %s48_s7 = int_to_ptr.vmem [resolvable:$true] %s47_s7 }
   0xa   :  { %53 = dma.hbm_to_vmem [thread:$0]  %s46_s1, 2048, %s48_s7, [#allocation7], %s423_s26, %s423_s26, %s424_s27  }
   0xb   :  { %416 = dma.done.wait [#allocation4], 256  }
   0xc   :  { %417 = vsyncadd [#allocation4], 4294967040 }
   0xd   :  { %418 = dma.done.wait [#allocation7], 4096  }
   0xe   :  { %419 = vsyncadd [#allocation7], 4294963200  ;;  %v89_v0 = vld [vmem:[#allocation6 + $0x78] sm:$0xff]  ;;  %v88_v1 = vld [vmem:[#allocation6 + $0x70] sm:$0xff]  ;;  %s427_s10 = smov [#allocation9]   ;;  %s260_s14 = sshll.u32 %s523_s5, 4  ;;  %s261_s14 = int_to_ptr.hbm [resolvable:$true] %s260_s14 }
   0xf   :  { %94 = vmatpush.msra.mxu0 %v89_v0  ;;  %276 = vmatpush.msra.mxu2 %v89_v0  ;;  %v87_v2 = vld [vmem:[#allocation6 + $0x68] sm:$0xff]  ;;  %v86_v3 = vld [vmem:[#allocation6 + $0x60] sm:$0xff]  ;;  %v85_v4 = vld [vmem:[#allocation6 + $0x58] sm:$0xff]  ;;  %s258_s11 = sshll.u32 %s427_s10, 4  ;;  %s259_s11 = int_to_ptr.vmem [resolvable:$true] %s258_s11 }
  0x10   :  { %v84_v5 = vld [vmem:[#allocation6 + $0x50] sm:$0xff]  ;;  %v83_v6 = vld [vmem:[#allocation6 + $0x48] sm:$0xff]  ;;  %v82_v7 = vld [vmem:[#allocation6 + $0x40] sm:$0xff] }
  0x11   :  { %95 = vmatpush.msra.mxu0 %v88_v1  ;;  %277 = vmatpush.msra.mxu2 %v88_v1  ;;  %v81_v8 = vld [vmem:[#allocation6 + $0x38] sm:$0xff]  ;;  %v80_v9 = vld [vmem:[#allocation6 + $0x30] sm:$0xff]  ;;  %v79_v10 = vld [vmem:[#allocation6 + $0x28] sm:$0xff] }
  0x12   :  { %v78_v11 = vld [vmem:[#allocation6 + $0x20] sm:$0xff]  ;;  %v77_v12 = vld [vmem:[#allocation6 + $0x18] sm:$0xff]  ;;  %v76_v13 = vld [vmem:[#allocation6 + $0x10] sm:$0xff] }
  0x13   :  { %96 = vmatpush.msra.mxu0 %v87_v2  ;;  %278 = vmatpush.msra.mxu2 %v87_v2  ;;  %v75_v14 = vld [vmem:[#allocation6 + $0x8] sm:$0xff]  ;;  %v74_v15 = vld [vmem:[#allocation6] sm:$0xff]  ;;  %v72_v16 = vld [vmem:[#allocation3] sm:$0xff] }
  0x14   :  { %v73_v17 = vld [vmem:[#allocation3 + $0x8] sm:$0xff]  ;;  %v223_v19 = vld [vmem:[#allocation8 + $0x70] sm:$0xff]  ;;  %v222_v20 = vld [vmem:[#allocation8 + $0x68] sm:$0xff] }
  0x15   :  { %97 = vmatpush.msra.mxu0 %v86_v3  ;;  %279 = vmatpush.msra.mxu2 %v86_v3  ;;  %v224_v18 = vld [vmem:[#allocation8 + $0x78] sm:$0xff]  ;;  %v221_v21 = vld [vmem:[#allocation8 + $0x60] sm:$0xff]  ;;  %v314_v22 = vld [vmem:[%s520_s2] ss:$0 sm:$0xff] }
  0x16   :  { %229 = vmatpush.msra.mxu1 %v224_v18  ;;  %292 = vmatpush.msra.mxu3 %v224_v18  ;;  %v220_v23 = vld [vmem:[#allocation8 + $0x58] sm:$0xff]  ;;  %v219_v25 = vld [vmem:[#allocation8 + $0x50] sm:$0xff]  ;;  %v218_v27 = vld [vmem:[#allocation8 + $0x48] sm:$0xff] }
  0x17   :  { %98 = vmatpush.msra.mxu0 %v85_v4  ;;  %280 = vmatpush.msra.mxu2 %v85_v4  ;;  %v217_v29 = vld [vmem:[#allocation8 + $0x40] sm:$0xff]  ;;  %v216_v30 = vld [vmem:[#allocation8 + $0x38] sm:$0xff]  ;;  %v215_v33 = vld [vmem:[#allocation8 + $0x30] sm:$0xff] }
  0x18   :  { %230 = vmatpush.msra.mxu1 %v223_v19  ;;  %293 = vmatpush.msra.mxu3 %v223_v19  ;;  %v214_v36 = vld [vmem:[#allocation8 + $0x28] sm:$0xff]  ;;  %v213_v39 = vld [vmem:[#allocation8 + $0x20] sm:$0xff]  ;;  %v212_v43 = vld [vmem:[#allocation8 + $0x18] sm:$0xff] }
  0x19   :  { %99 = vmatpush.msra.mxu0 %v84_v5  ;;  %281 = vmatpush.msra.mxu2 %v84_v5  ;;  %v211_v47 = vld [vmem:[#allocation8 + $0x10] sm:$0xff]  ;;  %v210_v52 = vld [vmem:[#allocation8 + $0x8] sm:$0xff]  ;;  %v209_v56 = vld [vmem:[#allocation8] sm:$0xff] }
  0x1a   :  { %231 = vmatpush.msra.mxu1 %v222_v20  ;;  %294 = vmatpush.msra.mxu3 %v222_v20 }
  0x1b   :  { %100 = vmatpush.msra.mxu0 %v83_v6  ;;  %282 = vmatpush.msra.mxu2 %v83_v6 }
  0x1c   :  { %232 = vmatpush.msra.mxu1 %v221_v21  ;;  %295 = vmatpush.msra.mxu3 %v221_v21 }
  0x1d   :  { %101 = vmatpush.msra.mxu0 %v82_v7  ;;  %283 = vmatpush.msra.mxu2 %v82_v7 }
  0x1e   :  { %233 = vmatpush.msra.mxu1 %v220_v23  ;;  %296 = vmatpush.msra.mxu3 %v220_v23 }
  0x1f   :  { %102 = vmatpush.msra.mxu0 %v81_v8  ;;  %284 = vmatpush.msra.mxu2 %v81_v8 }
  0x20   :  { %234 = vmatpush.msra.mxu1 %v219_v25  ;;  %297 = vmatpush.msra.mxu3 %v219_v25 }
  0x21   :  { %103 = vmatpush.msra.mxu0 %v80_v9  ;;  %285 = vmatpush.msra.mxu2 %v80_v9 }
  0x22   :  { %235 = vmatpush.msra.mxu1 %v218_v27  ;;  %298 = vmatpush.msra.mxu3 %v218_v27 }
  0x23   :  { %104 = vmatpush.msra.mxu0 %v79_v10  ;;  %286 = vmatpush.msra.mxu2 %v79_v10 }
  0x24   :  { %236 = vmatpush.msra.mxu1 %v217_v29  ;;  %299 = vmatpush.msra.mxu3 %v217_v29 }
  0x25   :  { %105 = vmatpush.msra.mxu0 %v78_v11  ;;  %287 = vmatpush.msra.mxu2 %v78_v11 }
  0x26   :  { %237 = vmatpush.msra.mxu1 %v216_v30  ;;  %300 = vmatpush.msra.mxu3 %v216_v30 }
  0x27   :  { %106 = vmatpush.msra.mxu0 %v77_v12  ;;  %288 = vmatpush.msra.mxu2 %v77_v12 }
  0x28   :  { %238 = vmatpush.msra.mxu1 %v215_v33  ;;  %301 = vmatpush.msra.mxu3 %v215_v33 }
  0x29   :  { %107 = vmatpush.msra.mxu0 %v76_v13  ;;  %289 = vmatpush.msra.mxu2 %v76_v13 }
  0x2a   :  { %239 = vmatpush.msra.mxu1 %v214_v36  ;;  %302 = vmatpush.msra.mxu3 %v214_v36 }
  0x2b   :  { %108 = vmatpush.msra.mxu0 %v75_v14  ;;  %290 = vmatpush.msra.mxu2 %v75_v14 }
  0x2c   :  { %240 = vmatpush.msra.mxu1 %v213_v39  ;;  %303 = vmatpush.msra.mxu3 %v213_v39 }
  0x2d   :  { %109 = vmatpush.msra.mxu0 %v74_v15  ;;  %291 = vmatpush.msra.mxu2 %v74_v15 }
  0x2e   :  { %110 = vmatmul.f32.vlgmr.msra.gmra.mxu0 %v72_v16  ;;  %113 = vmatmul.f32.vlgmr.msra.gmra.mxu2 %v73_v17 }
  0x2f   :  { %241 = vmatpush.msra.mxu1 %v212_v43  ;;  %304 = vmatpush.msra.mxu3 %v212_v43 }
  0x31   :  { %242 = vmatpush.msra.mxu1 %v211_v47  ;;  %305 = vmatpush.msra.mxu3 %v211_v47 }
  0x33   :  { %243 = vmatpush.msra.mxu1 %v210_v52  ;;  %306 = vmatpush.msra.mxu3 %v210_v52 }
  0x35   :  { %244 = vmatpush.msra.mxu1 %v209_v56  ;;  %307 = vmatpush.msra.mxu3 %v209_v56  ;;  %v315_v56 = vld [vmem:[%s522_s4] ss:$0 sm:$0xff] }
  0xab   :  { %v111_v24 = vpop.f32.mrf.mxu0 }
  0xac   :  { %v479_v26 = vadd.f32 %v314_v22, %v111_v24 }
  0xae   :  { %v482_v28 = vmul.f32 0.70710677, %v479_v26  ;;  %v117_v47 = vmul.f32 0.5, %v479_v26 }
  0xb0   :  { %v121_v31 = vmul.f32 %v482_v28, %v482_v28 }
  0xb1   :  { %v114_v32 = vpop.f32.mrf.mxu2 }
  0xb2   :  { %v486_v34 = vmin.f32 %v121_v31, 16.0  ;;  %v488_v35 = vadd.f32 %v314_v22, %v114_v32 }
  0xb4   :  { %v123_v37 = vmul.f32 2.1237322e-06, %v486_v34  ;;  %v492_v38 = vmul.f32 0.70710677, %v488_v35  ;;  %v134_v40 = vmul.f32 3.8918573e-05, %v486_v34 }
  0xb6   :  { %v124_v41 = vadd.f32 0.00028619796, %v123_v37  ;;  %v161_v42 = vmul.f32 %v492_v38, %v492_v38  ;;  %v135_v44 = vadd.f32 0.001143296, %v134_v40 }
  0xb8   :  { %v125_v45 = vmul.f32 %v124_v41, %v486_v34  ;;  %v162_v46 = vmin.f32 %v161_v42, 16.0  ;;  %v136_v48 = vmul.f32 %v135_v44, %v486_v34 }
  0xba   :  { %v163_v49 = vmul.f32 2.1237322e-06, %v162_v46  ;;  %v174_v50 = vmul.f32 3.8918573e-05, %v162_v46  ;;  %v126_v51 = vadd.f32 0.0036580483, %v125_v45 }
  0xbb   :  { %v137_v53 = vadd.f32 0.014752088, %v136_v48 }
  0xbc   :  { %v164_v54 = vadd.f32 0.00028619796, %v163_v49  ;;  %v175_v55 = vadd.f32 0.001143296, %v174_v50  ;;  %v127_v60 = vmul.f32 %v126_v51, %v486_v34 }
  0xbd   :  { %v138_v57 = vmul.f32 %v137_v53, %v486_v34  ;;  %v118_v53 = vmul.f32 0.5, %v488_v35 }
  0xbe   :  { %v165_v58 = vmul.f32 %v164_v54, %v162_v46  ;;  %v176_v59 = vmul.f32 %v175_v55, %v162_v46  ;;  %v128_v2 = vadd.f32 0.05243302, %v127_v60 }
  0xbf   :  { %v139_v61 = vadd.f32 0.112945676, %v138_v57 }
  0xc0   :  { %v166_v62 = vadd.f32 0.0036580483, %v165_v58  ;;  %v177_v63 = vadd.f32 0.014752088, %v176_v59  ;;  %v129_v8 = vmul.f32 %v128_v2, %v486_v34 }
  0xc1   :  { %v140_v0 = vmul.f32 %v139_v61, %v486_v34 }
  0xc2   :  { %v178_v1 = vmul.f32 %v177_v63, %v162_v46  ;;  %v167_v4 = vmul.f32 %v166_v62, %v162_v46  ;;  %v130_v13 = vadd.f32 0.18741608, %v129_v8 }
  0xc3   :  { %v141_v3 = vadd.f32 0.4994258, %v140_v0 }
  0xc4   :  { %v179_v5 = vadd.f32 0.112945676, %v178_v1  ;;  %v168_v10 = vadd.f32 0.05243302, %v167_v4  ;;  %v131_v17 = vmul.f32 %v130_v13, %v486_v34 }
  0xc5   :  { %v142_v6 = vmul.f32 %v141_v3, %v486_v34 }
  0xc6   :  { %v180_v7 = vmul.f32 %v179_v5, %v162_v46  ;;  %v169_v14 = vmul.f32 %v168_v10, %v162_v46  ;;  %v132_v21 = vadd.f32 1.1283791, %v131_v17 }
  0xc7   :  { %v143_v9 = vadd.f32 1.0, %v142_v6 }
  0xc8   :  { %v181_v11 = vadd.f32 0.4994258, %v180_v7  ;;  %v170_v18 = vadd.f32 0.18741608, %v169_v14  ;;  %v133_v31 = vmul.f32 %v132_v21, %v482_v28 }
  0xc9   :  { %316 = vrcp.f32 %v143_v9  ;;  %v155_v22 = vand.u32 2147483648, %v143_v9  ;;  %v153_v27 = vand.u32 2147483647, %v143_v9  ;;  %vm149_vm1 = vweird.f32 %v143_v9 }
  0xca   :  { %v182_v12 = vmul.f32 %v181_v11, %v162_v46  ;;  %v171_v24 = vmul.f32 %v170_v18, %v162_v46 }
  0xcb   :  { %v156_v32 = vor.u32 1.1754944e-38, %v155_v22  ;;  %vm154_vm3 = vcmp.eq.f32.partialorder %v153_v27, 8.507059e+37 }
  0xcc   :  { %v183_v15 = vadd.f32 1.0, %v182_v12  ;;  %v172_v36 = vadd.f32 1.1283791, %v171_v24 }
  0xce   :  { %318 = vrcp.f32 %v183_v15  ;;  %v195_v37 = vand.u32 2147483648, %v183_v15  ;;  %v193_v41 = vand.u32 2147483647, %v183_v15  ;;  %vm189_vm5 = vweird.f32 %v183_v15 }
  0xcf   :  { %v317_v16 = vpop.eup %316  ;;  %v173_v46 = vmul.f32 %v172_v36, %v492_v38 }
  0xd0   :  { %v145_v19 = vmul.f32 %v317_v16, %v143_v9  ;;  %vm150_vm0 = vweird.f32 %v317_v16  ;;  %v196_v45 = vor.u32 1.1754944e-38, %v195_v37  ;;  %vm194_vm7 = vcmp.eq.f32.partialorder %v193_v41, 8.507059e+37 }
  0xd1   :  { %vm151_vm2 = vmor %vm149_vm1, %vm150_vm0 }
  0xd2   :  { %v146_v20 = vsub.f32 1.0, %v145_v19 }
  0xd4   :  { %v319_v23 = vpop.eup %318  ;;  %v147_v25 = vmul.f32 %v317_v16, %v146_v20 }
  0xd5   :  { %v185_v29 = vmul.f32 %v319_v23, %v183_v15  ;;  %vm190_vm4 = vweird.f32 %v319_v23 }
  0xd6   :  { %v148_v30 = vadd.f32 %v317_v16, %v147_v25  ;;  %vm191_vm6 = vmor %vm189_vm5, %vm190_vm4 }
  0xd7   :  { %v186_v33 = vsub.f32 1.0, %v185_v29 }
  0xd8   :  { %v152_v34 = vsel %vm151_vm2, %v317_v16, %v148_v30 }
  0xd9   :  { %v157_v39 = vsel %vm154_vm3, %v156_v32, %v152_v34  ;;  %v187_v40 = vmul.f32 %v319_v23, %v186_v33 }
  0xda   :  { %v158_v42 = vmul.f32 %v157_v39, %v133_v31 }
  0xdb   :  { %v188_v43 = vadd.f32 %v319_v23, %v187_v40 }
  0xdc   :  { %v274_v44 = vclamps-f32 %v158_v42, 1.0 }
  0xdd   :  { %v192_v28 = vsel %vm191_vm6, %v319_v23, %v188_v43 }
  0xde   :  { %v201_v48 = vadd.f32 1.0, %v274_v44  ;;  %v197_v49 = vsel %vm194_vm7, %v196_v45, %v192_v28 }
  0xdf   :  { %v198_v50 = vmul.f32 %v197_v49, %v173_v46 }
  0xe0   :  { %v203_v51 = vmul.f32 %v201_v48, %v117_v47 }
  0xe1   :  { %v275_v52 = vclamps-f32 %v198_v50, 1.0 }
  0xe2   :  { %245 = vmatmul.f32.vlgmr.msra.gmra.mxu1 %v203_v51 }
  0xe3   :  { %v202_v54 = vadd.f32 1.0, %v275_v52 }
  0xe5   :  { %v204_v55 = vmul.f32 %v202_v54, %v118_v53 }
  0xe7   :  { %248 = vmatmul.f32.vlgmr.msra.gmra.mxu3 %v204_v55 }
 0x15f   :  { %v246_v38 = vpop.f32.mrf.mxu1 }
 0x160   :  { %v247_v57 = vadd.f32 %v315_v56, %v246_v38 }
 0x162   :  { %252 = vst [vmem:[#allocation9] sm:$0xff] %v247_v57 }
 0x16a   :  { %v249_v26 = vpop.f32.mrf.mxu3 }
 0x16b   :  { %v250_v58 = vadd.f32 %v315_v56, %v249_v26 }
 0x16d   :  { %253 = vst [vmem:[#allocation9 + $0x8] sm:$0xff] %v250_v58 }
 0x16e   :  { %266 = dma.vmem_to_hbm [thread:$0]  %s259_s11, 256, %s261_s14, [#allocation5], %s423_s26, %s423_s26, %s424_s27  }
 0x16f   :  { %420 = dma.done.wait [#allocation5], 256  }
 0x170   :  { %421 = vsyncadd [#allocation5], 4294967040 }
 0x171   :  { %271 = vsyncpa [#allocation4], 1 }
 0x172   :  { %272 = vsyncpa [#allocation7], 1 }
 0x173   :  { %273 = vsyncpa [#allocation5], 1 }

</bundles_post_ra>
